<compile_context>
chip_gen: v6e
topology: v6e:2x2x1
jax: 0.10.0
libtpu: 0.0.40
codegen_flags: <defaults>
</compile_context>

<pallas_src>
import jax
import jax.numpy as jnp
from jax.experimental import pallas as pl
from jax.experimental.pallas import tpu as pltpu


# -----------------------------------------------------------------------------
# small helpers
# -----------------------------------------------------------------------------
def _round_up(x, m):
    return ((x + m - 1) // m) * m


def _cdiv(a, b):
    return -(-a // b)


def _vmem_capacity_bytes():
    # NOTE: assumed per-TensorCore; budget factors below are conservative so a
    # per-chip report on 2-TC parts still leaves margin at realistic sizes.
    try:
        return int(pltpu.get_tpu_info().vmem_capacity_bytes)
    except Exception:
        return 64 * 1024 * 1024          # v7x per-core VMEM (most conservative)


def _mxu_min_tile():
    """Minimum MXU-friendly contraction tile: 256 on v6e/v7x, 128 on older."""
    try:
        kind = jax.devices()[0].device_kind.lower()
    except Exception:
        return 256
    for tag in ("v2", "v3", "v4", "v5"):
        if tag in kind:
            return 128
    return 256


# -----------------------------------------------------------------------------
# One-time weight preparation (hoisted out of the per-step forward)
# -----------------------------------------------------------------------------
def prepare_channel_mix_weights(wk_t, wv_t, wr_t, c3_w, c3_b, *,
                                force_tiled=False, hidden_tile=None):
    """Pad to lane-dense multiples of 128, cast to bf16, concat [Wk|Wr].

    wk_t: (C, H)   key.weight^T        wv_t: (H, C)  value.weight^T
    wr_t: (C, C)   receptance.weight^T c3_w: (C, 3C) conv3x3 1x1 weight
    c3_b: (C,)     conv3x3 bias

    Returns a dict of device arrays; its key set encodes the chosen path
    ('wkr' present => fully-fused path, 'wk'/'wv' 3-D => tiled fallback).
    """
    C, Hd = wk_t.shape
    C3 = c3_w.shape[1]
    Cp = _round_up(C, 128)
    Hp = _round_up(Hd, 128)
    C3p = _round_up(C3, 128)

    c3w_t = jnp.pad(jnp.asarray(c3_w).T,
                    ((0, C3p - C3), (0, Cp - C))).astype(jnp.bfloat16)
    c3b_p = jnp.pad(jnp.asarray(c3_b), (0, Cp - C)).astype(jnp.float32).reshape(1, Cp)
    wr_p = jnp.pad(wr_t, ((0, Cp - C), (0, Cp - C))).astype(jnp.bfloat16)

    capacity = _vmem_capacity_bytes()
    budget = int(0.75 * capacity)
    nominal_tile = 256

    # fused path VMEM need (weights double-buffered + nominal activations/temps)
    fused_w = (C3p * Cp + Cp * (Hp + Cp) + Hp * Cp) * 2 * 2
    fused_act = nominal_tile * (2 * C3p * 2 + 2 * Cp * 4
                                + (Hp + 3 * Cp) * 4 + Hp * 2)
    use_tiled = force_tiled or (hidden_tile is not None) or (fused_w + fused_act > budget)

    if not use_tiled:
        wk_p = jnp.pad(wk_t, ((0, Cp - C), (0, Hp - Hd))).astype(jnp.bfloat16)
        wv_p = jnp.pad(wv_t, ((0, Hp - Hd), (0, Cp - C))).astype(jnp.bfloat16)
        return dict(c3w=c3w_t, c3b=c3b_p,
                    wkr=jnp.concatenate([wk_p, wr_p], axis=1),   # (Cp, Hp+Cp)
                    wv=wv_p)                                      # (Hp, Cp)

    # Tiled fallback: hidden axis streamed in th-wide slices.
    if hidden_tile is not None:
        th = max(128, _round_up(hidden_tile, 128))
    else:
        floor = max(128, _mxu_min_tile())        # 256 on v6e/v7x, 128 on v5e

        def tiled_need(t):
            w = 2 * 2 * (Cp * t) * 2 + Cp * Cp * 2 * 2
            act = nominal_tile * (2 * Cp * 2 + 4 * Cp * 4 + (t + Cp) * 4)
            return w + act

        th = Hp
        while th > floor and tiled_need(th) > budget:
            th = max(floor, _round_up(th // 2, 128))

    Hpt = _round_up(Hd, th)                      # hidden axis tiles evenly
    n_j = Hpt // th
    wk_p = jnp.pad(wk_t, ((0, Cp - C), (0, Hpt - Hd))).astype(jnp.bfloat16)
    wv_p = jnp.pad(wv_t, ((0, Hpt - Hd), (0, Cp - C))).astype(jnp.bfloat16)
    wk_blk = wk_p.reshape(Cp, n_j, th).transpose(1, 0, 2)        # (n_j, Cp, th)
    wv_blk = wv_p.reshape(n_j, th, Cp)                           # (n_j, th, Cp)
    return dict(c3w=c3w_t, c3b=c3b_p, wk=wk_blk, wv=wv_blk, wr=wr_p)


# -----------------------------------------------------------------------------
# Pallas kernels
# -----------------------------------------------------------------------------
def _channel_mix_fused_kernel(tok_ref, c3w_ref, c3b_ref, wkr_ref, wv_ref, o_ref):
    # tok_ref: (T, 3Cp) bf16  c3w_ref: (3Cp, Cp) bf16  c3b_ref: (1, Cp) f32
    # wkr_ref: (Cp, Hp+Cp) bf16 = [Wk^T | Wr^T]         wv_ref: (Hp, Cp) bf16
    hp = wv_ref.shape[0]
    # omni_shift's final 1x1 conv, fused so tokens stream from HBM exactly once
    x = jnp.dot(tok_ref[...], c3w_ref[...], preferred_element_type=jnp.float32)
    x = (x + c3b_ref[...]).astype(jnp.bfloat16)                    # (T, Cp)
    kr = jnp.dot(x, wkr_ref[...], preferred_element_type=jnp.float32)  # (T, Hp+Cp)
    k = jnp.square(jnp.maximum(kr[:, :hp], 0.0))                   # relu^2, f32
    kv = jnp.dot(k.astype(jnp.bfloat16), wv_ref[...],
                 preferred_element_type=jnp.float32)                # (T, Cp)
    o_ref[...] = (jax.nn.sigmoid(kr[:, hp:]) * kv).astype(o_ref.dtype)


def _channel_mix_tiled_kernel(x_ref, wk_ref, wv_ref, wr_ref, o_ref, r_scr, kv_acc):
    # Hidden dim tiled along grid axis 1 ("arbitrary"); kv accumulated in a f32
    # VMEM scratch.  Receptance matmul + sigmoid are done at j == 0 so the last
    # reduction step is as short as the others (output store not serialized
    # behind an extra Cp x Cp matmul).
    j = pl.program_id(1)

    @pl.when(j == 0)
    def _():
        kv_acc[...] = jnp.zeros_like(kv_acc)
        r = jnp.dot(x_ref[...], wr_ref[...], preferred_element_type=jnp.float32)
        r_scr[...] = jax.nn.sigmoid(r)

    k = jnp.dot(x_ref[...], wk_ref[0], preferred_element_type=jnp.float32)
    k = jnp.square(jnp.maximum(k, 0.0))
    kv_acc[...] += jnp.dot(k.astype(jnp.bfloat16), wv_ref[0],
                           preferred_element_type=jnp.float32)

    @pl.when(j == pl.num_programs(1) - 1)
    def _():
        o_ref[...] = (r_scr[...] * kv_acc[...]).astype(o_ref.dtype)


# -----------------------------------------------------------------------------
# Wrapper
# -----------------------------------------------------------------------------
def channel_mix_pallas(tok3, n_channels, cm, *, out_dtype=None, tokens_tile=None):
    """sigmoid(x@Wr)*(relu(x@Wk)^2@Wv) with x = tok3 @ c3^T + b fused in.

    tok3: (N, 3C) token-major features (pre 1x1 conv), any float dtype.
    n_channels: C (static).  cm: dict from prepare_channel_mix_weights().
    out_dtype: pass jnp.bfloat16 to halve writeback if downstream tolerates it.
    """
    N, C3 = tok3.shape
    C = n_channels
    out_dtype = out_dtype if out_dtype is not None else tok3.dtype
    out_isz = jnp.dtype(out_dtype).itemsize

    Cp = cm['c3b'].shape[1]
    C3p = cm['c3w'].shape[0]
    fused = 'wkr' in cm

    capacity = _vmem_capacity_bytes()
    budget = int(0.75 * capacity)
    quantum = 256                           # MXU-shaped, bf16-sublane friendly

    if fused:
        Hp = cm['wv'].shape[0]
        w_bytes = (C3p * Cp + Cp * (Hp + Cp) + Hp * Cp) * 2 * 2 + 8 * Cp * 4

        def need(t):
            return w_bytes + t * (2 * C3p * 2 + 2 * Cp * out_isz
                                  + (Hp + 3 * Cp) * 4 + Hp * 2)
    else:
        n_j, _, th = cm['wk'].shape
        Hp = n_j * th
        w_bytes = 2 * 2 * (Cp * th) * 2 + Cp * Cp * 2 * 2

        def need(t):
            return w_bytes + t * (2 * Cp * 2 + 2 * Cp * out_isz
                                  + 2 * Cp * 4 + (th + Cp) * 4)

    # ---- token tile: big enough to amortize per-step overhead & weight
    # re-streaming, small enough to give >= ~4 grid steps (megacore/pipeline).
    if tokens_tile is not None:
        tile = max(16, _round_up(min(tokens_tile, _round_up(N, 16)), 16))
    elif N <= quantum:
        tile = _round_up(max(N, 16), 16)
    else:
        want = 1024 if capacity >= (96 << 20) else 512
        tile = min(want, max(quantum, _round_up(_cdiv(N, 4), quantum)))
        while tile > quantum and need(tile) > budget:
            tile = max(quantum, tile // 2)
        if not fused:
            # Wk/Wv slices are re-streamed once per token tile: grow the tile
            # while VMEM allows (biggest win on v5e's slower HBM).
            limit = max(quantum, _round_up(_cdiv(N, 2), quantum))
            while tile * 2 <= min(2048, limit) and need(tile * 2) <= budget:
                tile *= 2
    Np = _round_up(N, tile)
    grid_i = Np // tile

    est = need(tile)
    vmem_limit = int(min(capacity - (8 << 20), max(2 * est, 64 << 20)))
    vmem_limit = max(vmem_limit, 32 << 20)

    # Producer-side pad + bf16 cast (fuses with the upstream transpose, so the
    # token tensor is written to / read from HBM exactly once).
    tok3_p = jnp.pad(tok3, ((0, Np - N), (0, C3p - C3))).astype(jnp.bfloat16)

    if fused:
        cost = pl.CostEstimate(
            flops=2 * Np * (C3p * Cp + Cp * Hp + Hp * Cp + Cp * Cp),
            transcendentals=Np * Cp,
            bytes_accessed=Np * C3p * 2 + Np * Cp * out_isz
                           + (C3p * Cp + Cp * (Hp + Cp) + Hp * Cp) * 2)
        out = pl.pallas_call(
            _channel_mix_fused_kernel,
            out_shape=jax.ShapeDtypeStruct((Np, Cp), out_dtype),
            grid_spec=pltpu.PrefetchScalarGridSpec(
                num_scalar_prefetch=0,
                grid=(grid_i,),
                in_specs=[
                    pl.BlockSpec((tile, C3p), lambda i: (i, 0)),
                    pl.BlockSpec((C3p, Cp), lambda i: (0, 0)),
                    pl.BlockSpec((1, Cp), lambda i: (0, 0)),
                    pl.BlockSpec((Cp, Hp + Cp), lambda i: (0, 0)),
                    pl.BlockSpec((Hp, Cp), lambda i: (0, 0)),
                ],
                out_specs=pl.BlockSpec((tile, Cp), lambda i: (i, 0)),
            ),
            compiler_params=pltpu.CompilerParams(
                dimension_semantics=("parallel",),
                vmem_limit_bytes=vmem_limit),
            cost_estimate=cost,
        )(tok3_p, cm['c3w'], cm['c3b'], cm['wkr'], cm['wv'])
    else:
        # Large-n_embd fallback: the 1x1-conv matmul stays in XLA here (the op
        # is compute-bound at these sizes and keeping c3w out of VMEM leaves
        # room for >=256-wide MXU tiles of Wk/Wv).
        x = jnp.dot(tok3_p, cm['c3w'], preferred_element_type=jnp.float32)
        x = (x + cm['c3b']).astype(jnp.bfloat16)                 # (Np, Cp)
        cost = pl.CostEstimate(
            flops=2 * Np * (Cp * Hp + Hp * Cp + Cp * Cp),
            transcendentals=Np * Cp,
            bytes_accessed=Np * Cp * 2 + Np * Cp * out_isz
                           + grid_i * (Cp * Hp + Hp * Cp) * 2 + Cp * Cp * 2)
        out = pl.pallas_call(
            _channel_mix_tiled_kernel,
            out_shape=jax.ShapeDtypeStruct((Np, Cp), out_dtype),
            grid_spec=pltpu.PrefetchScalarGridSpec(
                num_scalar_prefetch=0,
                grid=(grid_i, n_j),
                in_specs=[
                    pl.BlockSpec((tile, Cp), lambda i, j: (i, 0)),
                    pl.BlockSpec((1, Cp, th), lambda i, j: (j, 0, 0)),
                    pl.BlockSpec((1, th, Cp), lambda i, j: (j, 0, 0)),
                    pl.BlockSpec((Cp, Cp), lambda i, j: (0, 0)),
                ],
                out_specs=pl.BlockSpec((tile, Cp), lambda i, j: (i, 0)),
                scratch_shapes=[pltpu.VMEM((tile, Cp), jnp.float32),
                                pltpu.VMEM((tile, Cp), jnp.float32)],
            ),
            compiler_params=pltpu.CompilerParams(
                dimension_semantics=("parallel", "arbitrary"),
                vmem_limit_bytes=vmem_limit),
            cost_estimate=cost,
        )(x, cm['wk'], cm['wv'], cm['wr'])

    return out[:N, :C]


# -----------------------------------------------------------------------------
# Plain-JAX glue: omni_shift = snake_conv (literal port of the PyTorch forward)
# -----------------------------------------------------------------------------
def conv2d(x, w, b=None, stride=(1, 1), padding=((0, 0), (0, 0))):
    out = jax.lax.conv_general_dilated(
        x, w, window_strides=stride, padding=padding,
        dimension_numbers=('NCHW', 'OIHW', 'NCHW'))
    if b is not None:
        out = out + b[None, :, None, None]
    return out


def group_norm(x, num_groups, weight, bias, eps=1e-5):
    B, C, H, W = x.shape
    xg = x.reshape(B, num_groups, C // num_groups, H, W)
    mean = xg.mean(axis=(2, 3, 4), keepdims=True)
    var = xg.var(axis=(2, 3, 4), keepdims=True)
    xg = (xg - mean) / jnp.sqrt(var + eps)
    x = xg.reshape(B, C, H, W)
    return x * weight[None, :, None, None] + bias[None, :, None, None]


def spatial_attention(x, w, b):
    x_avg = jnp.mean(x, axis=1, keepdims=True)
    x_max = jnp.max(x, axis=1, keepdims=True)
    x2 = jnp.concatenate([x_avg, x_max], axis=1)
    sattn = jax.nn.sigmoid(conv2d(x2, w, b, padding=((2, 2), (2, 2))))
    return sattn * x


def get_coordinate_map_2d(offset, morph, extend_scope=1.0):
    B, two_k, width, height = offset.shape
    K = two_k // 2
    center = K // 2
    y_offset_ = offset[:, :K]
    x_offset_ = offset[:, K:]

    y_center_ = jnp.broadcast_to(
        jnp.arange(width, dtype=jnp.float32)[None, :, None], (K, width, height))
    x_center_ = jnp.broadcast_to(
        jnp.arange(height, dtype=jnp.float32)[None, None, :], (K, width, height))

    if morph == 0:
        y_spread_ = jnp.zeros((K,), jnp.float32)
        x_spread_ = jnp.linspace(-center, center, K, dtype=jnp.float32)
    else:
        y_spread_ = jnp.linspace(-center, center, K, dtype=jnp.float32)
        x_spread_ = jnp.zeros((K,), jnp.float32)

    y_grid_ = jnp.broadcast_to(y_spread_[:, None, None], (K, width, height))
    x_grid_ = jnp.broadcast_to(x_spread_[:, None, None], (K, width, height))
    y_new_ = jnp.broadcast_to((y_center_ + y_grid_)[None], (B, K, width, height))
    x_new_ = jnp.broadcast_to((x_center_ + x_grid_)[None], (B, K, width, height))

    def cumulative_offset(off_bkwh):
        off = jnp.transpose(off_bkwh, (1, 0, 2, 3))          # k b w h
        rows = [None] * K
        rows[center] = jnp.zeros_like(off[center])
        for idx in range(1, center + 1):
            rows[center + idx] = rows[center + idx - 1] + off[center + idx]
            rows[center - idx] = rows[center - idx + 1] + off[center - idx]
        return jnp.transpose(jnp.stack(rows, axis=0), (1, 0, 2, 3))  # b k w h

    if morph == 0:
        y_new_ = y_new_ + cumulative_offset(y_offset_) * extend_scope
        y_map = jnp.transpose(y_new_, (0, 2, 1, 3)).reshape(B, width * K, height)
        x_map = jnp.transpose(x_new_, (0, 2, 1, 3)).reshape(B, width * K, height)
    else:
        x_new_ = x_new_ + cumulative_offset(x_offset_) * extend_scope
        y_map = jnp.transpose(y_new_, (0, 2, 3, 1)).reshape(B, width, height * K)
        x_map = jnp.transpose(x_new_, (0, 2, 3, 1)).reshape(B, width, height * K)
    return y_map, x_map


def _coordinate_map_scaling(cmap, vmin, vmax, a=-1.0, b=1.0):
    cmap = jnp.clip(cmap, vmin, vmax)
    scale = (b - a) / (vmax - vmin)
    return a + scale * (cmap - vmin)


def grid_sample_bilinear(feat, grid):
    # TODO(synk): data-dependent bilinear gather (grid_sample, align_corners=True
    # per the torch reference) kept in plain JAX; a Pallas version would need a
    # manual DMA gather which is not worthwhile at these sizes.
    B, C, H, W = feat.shape
    gx, gy = grid[..., 0], grid[..., 1]
    ix = (gx + 1.0) * 0.5 * (W - 1)
    iy = (gy + 1.0) * 0.5 * (H - 1)
    ix0 = jnp.floor(ix)
    iy0 = jnp.floor(iy)
    ix1, iy1 = ix0 + 1, iy0 + 1
    wx1, wy1 = ix - ix0, iy - iy0
    wx0, wy0 = 1.0 - wx1, 1.0 - wy1
    flat = feat.reshape(B, C, H * W)
    gh, gw = gx.shape[1], gx.shape[2]

    def gather(iy_, ix_):
        valid = ((ix_ >= 0) & (ix_ <= W - 1) & (iy_ >= 0) & (iy_ <= H - 1))
        ixc = jnp.clip(ix_, 0, W - 1).astype(jnp.int32)
        iyc = jnp.clip(iy_, 0, H - 1).astype(jnp.int32)
        idx = (iyc * W + ixc).reshape(B, 1, gh * gw)
        idx = jnp.broadcast_to(idx, (B, C, gh * gw))
        v = jnp.take_along_axis(flat, idx, axis=2).reshape(B, C, gh, gw)
        return v * valid[:, None].astype(feat.dtype)   # zeros padding

    v00 = gather(iy0, ix0)
    v01 = gather(iy0, ix1)
    v10 = gather(iy1, ix0)
    v11 = gather(iy1, ix1)
    out = (v00 * (wy0 * wx0)[:, None] + v01 * (wy0 * wx1)[:, None]
           + v10 * (wy1 * wx0)[:, None] + v11 * (wy1 * wx1)[:, None])
    return out


def get_interpolated_feature(feat, y_map, x_map):
    y_max = feat.shape[-2] - 1
    x_max = feat.shape[-1] - 1
    y_s = _coordinate_map_scaling(y_map, 0.0, float(y_max))
    x_s = _coordinate_map_scaling(x_map, 0.0, float(x_max))
    grid = jnp.stack([x_s, y_s], axis=-1)
    return grid_sample_bilinear(feat, grid)


def dsconv_pro(x, p, morph, K=5, extend_scope=1.0):
    sa = spatial_attention(x, p['sa_w'], p['sa_b'])
    offset = conv2d(sa, p['off_w'], p['off_b'], padding=((1, 1), (1, 1)))
    offset = group_norm(offset, K, p['gno_w'], p['gno_b'])
    offset = jnp.tanh(offset)
    y_map, x_map = get_coordinate_map_2d(offset, morph, extend_scope)
    deformed = get_interpolated_feature(x, y_map, x_map)
    if morph == 0:
        out = conv2d(deformed, p['dsc_w'], p['dsc_b'], stride=(K, 1))
    else:
        out = conv2d(deformed, p['dsc_w'], p['dsc_b'], stride=(1, K))
    out = group_norm(out, out.shape[1] // 4, p['gn_w'], p['gn_b'])
    return jax.nn.relu(out)


def se_layer(x, w1, w2):
    y = jnp.mean(x, axis=(2, 3))                      # (B, C)
    y = jax.nn.relu(y @ w1.T)
    y = jax.nn.sigmoid(y @ w2.T)
    return x * y[:, :, None, None]


def snake_conv_features(x, p):
    # snake_conv up to (and including) the SE layer; the final 1x1 conv is
    # fused into the Pallas channel-mix kernel.
    fea_x = dsconv_pro(x, p['dsx'], morph=0)
    fea_y = dsconv_pro(x, p['dsy'], morph=1)
    fea_0 = conv2d(x, p['c0_w'], p['c0_b'], padding=((1, 1), (2, 2)))
    fea_all = jnp.concatenate([fea_x, fea_0, fea_y], axis=1)
    return se_layer(fea_all, p['se_w1'], p['se_w2'])


# -----------------------------------------------------------------------------
# Full VRWKV_ChannelMix forward
# -----------------------------------------------------------------------------
def vrwkv_channelmix_forward(x, resolution, params):
    B, L, C = x.shape
    h, w = resolution
    # 'b (h w) c -> b c h w'
    x_img = jnp.transpose(x, (0, 2, 1)).reshape(B, C, h, w)
    fea_all = snake_conv_features(x_img, params['omni'])          # (B, 3C, h, w)
    # 'b c h w -> (b h w) c' — pad + bf16 cast fuses with this transpose inside
    # channel_mix_pallas, so the token tensor touches HBM exactly once.
    tok3 = jnp.transpose(fea_all.reshape(B, 3 * C, h * w), (0, 2, 1))
    tok3 = tok3.reshape(B * h * w, 3 * C)
    out = channel_mix_pallas(tok3, C, params['cm'])
    return out.reshape(B, h * w, C)


# -----------------------------------------------------------------------------
# Deterministic parameter init (shapes follow the PyTorch module __init__)
# -----------------------------------------------------------------------------
def init_params(key, n_embd, hidden_rate=4, K=5):
    hidden = int(hidden_rate * n_embd)
    keys = iter(jax.random.split(key, 32))

    def w(shape, scale=0.1):
        return jax.random.normal(next(keys), shape, jnp.float32) * scale

    def dsconv_params(morph):
        dsc_shape = ((n_embd, n_embd, K, 1) if morph == 0
                     else (n_embd, n_embd, 1, K))
        return dict(
            sa_w=w((1, 2, 5, 5)), sa_b=jnp.zeros((1,), jnp.float32),
            off_w=w((2 * K, n_embd, 3, 3)), off_b=jnp.zeros((2 * K,), jnp.float32),
            gno_w=jnp.ones((2 * K,), jnp.float32),
            gno_b=jnp.zeros((2 * K,), jnp.float32),
            dsc_w=w(dsc_shape), dsc_b=jnp.zeros((n_embd,), jnp.float32),
            gn_w=jnp.ones((n_embd,), jnp.float32),
            gn_b=jnp.zeros((n_embd,), jnp.float32),
        )

    omni = dict(
        dsx=dsconv_params(0),
        dsy=dsconv_params(1),
        c0_w=w((n_embd, n_embd, 3, 5)), c0_b=jnp.zeros((n_embd,), jnp.float32),
        c3_w=w((n_embd, 3 * n_embd, 1, 1)), c3_b=jnp.zeros((n_embd,), jnp.float32),
        se_w1=w((3, 3 * n_embd)),                     # Linear(3C, 3C // C = 3)
        se_w2=w((3 * n_embd, 3)),                     # Linear(3, 3C)
    )
    params = dict(
        omni=omni,
        wk_t=w((n_embd, hidden)),    # key.weight^T
        wv_t=w((hidden, n_embd)),    # value.weight^T
        wr_t=w((n_embd, n_embd)),    # receptance.weight^T
    )
    # One-time weight prep (pad / bf16 / concat), hoisted out of the forward.
    params['cm'] = prepare_channel_mix_weights(
        params['wk_t'], params['wv_t'], params['wr_t'],
        omni['c3_w'].reshape(n_embd, 3 * n_embd), omni['c3_b'])
    return params


if __name__ == "__main__":
    B, C, H, W = 2, 4, 16, 16
    key = jax.random.PRNGKey(0)
    kx, kp = jax.random.split(key)
    x = jax.random.normal(kx, (B, H * W, C), jnp.float32)
    params = init_params(kp, n_embd=C, hidden_rate=4)

    fwd = jax.jit(vrwkv_channelmix_forward, static_argnums=1)
    out = jax.block_until_ready(fwd(x, (H, W), params))
    assert out.shape == (B, H * W, C)
    assert jnp.all(jnp.isfinite(out))

    # Direct numerical checks of both kernel paths (non-multiple-of-128 sizes
    # exercise the pad-and-mask path).  The reference applies the same bf16
    # operand rounding as the kernel so the comparison is tight.
    kt = jax.random.split(kp, 6)
    Ct, Ht, Nt = 48, 192, 300
    tok = jax.random.normal(kt[0], (Nt, 3 * Ct), jnp.float32) * 0.5
    c3w = jax.random.normal(kt[1], (Ct, 3 * Ct), jnp.float32) * 0.1
    c3b = jax.random.normal(kt[2], (Ct,), jnp.float32) * 0.1
    wk = jax.random.normal(kt[3], (Ct, Ht), jnp.float32) * 0.1
    wv = jax.random.normal(kt[4], (Ht, Ct), jnp.float32) * 0.1
    wr = jax.random.normal(kt[5], (Ct, Ct), jnp.float32) * 0.1

    def _bf(a):
        return a.astype(jnp.bfloat16).astype(jnp.float32)

    def ref(t):
        xx = _bf(t) @ _bf(c3w.T) + c3b
        xb = _bf(xx)
        kk = jnp.square(jnp.maximum(xb @ _bf(wk), 0.0))
        return jax.nn.sigmoid(xb @ _bf(wr)) * (_bf(kk) @ _bf(wv))

    expect = ref(tok)
    cm_fused = prepare_channel_mix_weights(wk, wv, wr, c3w, c3b)
    cm_tiled = prepare_channel_mix_weights(wk, wv, wr, c3w, c3b,
                                           force_tiled=True, hidden_tile=128)
    got_fused = jax.block_until_ready(channel_mix_pallas(tok, Ct, cm_fused))
    got_tiled = jax.block_until_ready(channel_mix_pallas(tok, Ct, cm_tiled))
    for got in (got_fused, got_tiled):
        assert got.shape == expect.shape
        err = float(jnp.max(jnp.abs(got - expect)))
        assert jnp.allclose(got, expect, rtol=1e-2, atol=1e-2), err

    print("KERNEL_OK")
</pallas_src>

<mosaic_0001>
module attributes {stable_mosaic.version = 11 : i64} {
  func.func @_channel_mix_fused_kernel(%arg0: i32, %arg1: memref<256x128xbf16, #tpu.memory_space<vmem>>, %arg2: memref<128x128xbf16, #tpu.memory_space<vmem>>, %arg3: memref<1x128xf32, #tpu.memory_space<vmem>>, %arg4: memref<128x256xbf16, #tpu.memory_space<vmem>>, %arg5: memref<128x128xbf16, #tpu.memory_space<vmem>>, %arg6: memref<256x128xf32, #tpu.memory_space<vmem>>) attributes {dimension_semantics = [#tpu.dimension_semantics<parallel>], iteration_bounds = array<i64: 2>, scalar_prefetch = 0 : i64, scratch_operands = 0 : i64, tpu.core_type = #tpu.core_type<tc>, window_params = [{transform_indices = @transform_0, window_bounds = array<i64: 256, 128>}, {pipeline_mode = #tpu.pipeline_mode<synchronous>, transform_indices = @transform_1, window_bounds = array<i64: 128, 128>}, {pipeline_mode = #tpu.pipeline_mode<synchronous>, transform_indices = @transform_2, window_bounds = array<i64: 1, 128>}, {pipeline_mode = #tpu.pipeline_mode<synchronous>, transform_indices = @transform_3, window_bounds = array<i64: 128, 256>}, {pipeline_mode = #tpu.pipeline_mode<synchronous>, transform_indices = @transform_4, window_bounds = array<i64: 128, 128>}, {transform_indices = @transform_5, window_bounds = array<i64: 256, 128>}]} {
    %c0 = arith.constant 0 : index
    %c0_0 = arith.constant 0 : index
    %0 = vector.load %arg1[%c0, %c0_0] : memref<256x128xbf16, #tpu.memory_space<vmem>>, vector<256x128xbf16>
    %c0_1 = arith.constant 0 : index
    %c0_2 = arith.constant 0 : index
    %1 = vector.load %arg2[%c0_1, %c0_2] : memref<128x128xbf16, #tpu.memory_space<vmem>>, vector<128x128xbf16>
    %cst = arith.constant dense<0.000000e+00> : vector<256x128xf32>
    %2 = tpu.matmul %0, %1, %cst {dimension_numbers = #tpu.dot_dimension_numbers<[1], [0], [0], [1], [0, 0, 1, 1], [], []>} : vector<256x128xbf16>, vector<128x128xbf16>, vector<256x128xf32> -> vector<256x128xf32>
    %c0_3 = arith.constant 0 : index
    %c0_4 = arith.constant 0 : index
    %3 = vector.load %arg3[%c0_3, %c0_4] : memref<1x128xf32, #tpu.memory_space<vmem>>, vector<1x128xf32>
    %4 = vector.broadcast %3 : vector<1x128xf32> to vector<256x128xf32>
    %5 = arith.addf %2, %4 : vector<256x128xf32>
    %6 = arith.truncf %5 : vector<256x128xf32> to vector<256x128xbf16>
    %c0_5 = arith.constant 0 : index
    %c0_6 = arith.constant 0 : index
    %7 = vector.load %arg4[%c0_5, %c0_6] : memref<128x256xbf16, #tpu.memory_space<vmem>>, vector<128x256xbf16>
    %cst_7 = arith.constant dense<0.000000e+00> : vector<256x256xf32>
    %8 = tpu.matmul %6, %7, %cst_7 {dimension_numbers = #tpu.dot_dimension_numbers<[1], [0], [0], [1], [0, 0, 1, 1], [], []>} : vector<256x128xbf16>, vector<128x256xbf16>, vector<256x256xf32> -> vector<256x256xf32>
    %9 = vector.extract_strided_slice %8 {offsets = [0, 0], sizes = [256, 128], strides = [1, 1]} : vector<256x256xf32> to vector<256x128xf32>
    %cst_8 = arith.constant 0.000000e+00 : f32
    %10 = vector.broadcast %cst_8 : f32 to vector<256x128xf32>
    %11 = arith.maximumf %9, %10 : vector<256x128xf32>
    %12 = arith.mulf %11, %11 : vector<256x128xf32>
    %13 = arith.truncf %12 : vector<256x128xf32> to vector<256x128xbf16>
    %c0_9 = arith.constant 0 : index
    %c0_10 = arith.constant 0 : index
    %14 = vector.load %arg5[%c0_9, %c0_10] : memref<128x128xbf16, #tpu.memory_space<vmem>>, vector<128x128xbf16>
    %cst_11 = arith.constant dense<0.000000e+00> : vector<256x128xf32>
    %15 = tpu.matmul %13, %14, %cst_11 {dimension_numbers = #tpu.dot_dimension_numbers<[1], [0], [0], [1], [0, 0, 1, 1], [], []>} : vector<256x128xbf16>, vector<128x128xbf16>, vector<256x128xf32> -> vector<256x128xf32>
    %16 = vector.extract_strided_slice %8 {offsets = [0, 128], sizes = [256, 128], strides = [1, 1]} : vector<256x256xf32> to vector<256x128xf32>
    %17 = arith.negf %16 : vector<256x128xf32>
    %18 = math.exp %17 : vector<256x128xf32>
    %cst_12 = arith.constant 1.000000e+00 : f32
    %19 = vector.broadcast %cst_12 : f32 to vector<256x128xf32>
    %20 = arith.addf %19, %18 : vector<256x128xf32>
    %21 = arith.divf %19, %20 : vector<256x128xf32>
    %22 = arith.mulf %21, %15 : vector<256x128xf32>
    %c0_13 = arith.constant 0 : index
    %c0_14 = arith.constant 0 : index
    %23 = vector.load %arg6[%c0_13, %c0_14] : memref<256x128xf32, #tpu.memory_space<vmem>>, vector<256x128xf32>
    tpu.vector_store %arg6[%c0_13, %c0_14], %22 {strides = array<i32>} : memref<256x128xf32, #tpu.memory_space<vmem>>, vector<256x128xf32>,
    return
  }
  func.func @transform_0(%arg0: i32) -> (i32, i32) {
    %c0_i32 = arith.constant 0 : i32
    %c0_i32_0 = arith.constant 0 : i32
    return %arg0, %c0_i32 : i32, i32
  }
  func.func @transform_1(%arg0: i32) -> (i32, i32) {
    %c0_i32 = arith.constant 0 : i32
    %c0_i32_0 = arith.constant 0 : i32
    %c0_i32_1 = arith.constant 0 : i32
    return %c0_i32, %c0_i32_0 : i32, i32
  }
  func.func @transform_2(%arg0: i32) -> (i32, i32) {
    %c0_i32 = arith.constant 0 : i32
    %c0_i32_0 = arith.constant 0 : i32
    %c0_i32_1 = arith.constant 0 : i32
    return %c0_i32, %c0_i32_0 : i32, i32
  }
  func.func @transform_3(%arg0: i32) -> (i32, i32) {
    %c0_i32 = arith.constant 0 : i32
    %c0_i32_0 = arith.constant 0 : i32
    %c0_i32_1 = arith.constant 0 : i32
    return %c0_i32, %c0_i32_0 : i32, i32
  }
  func.func @transform_4(%arg0: i32) -> (i32, i32) {
    %c0_i32 = arith.constant 0 : i32
    %c0_i32_0 = arith.constant 0 : i32
    %c0_i32_1 = arith.constant 0 : i32
    return %c0_i32, %c0_i32_0 : i32, i32
  }
  func.func @transform_5(%arg0: i32) -> (i32, i32) {
    %c0_i32 = arith.constant 0 : i32
    %c0_i32_0 = arith.constant 0 : i32
    return %arg0, %c0_i32 : i32, i32
  }
}

</mosaic_0001>

<bundles_post_ra>
// kernel: vrwkv_channelmix_forward.1
= control target key start
LH: loop header
LB: loop body
LE: loop exit
PB: predicated region body
PF: predicated region fallthrough
CT: control target
= control target key end

     0   :  { %s1979_s18 = smov 0   ;;  %s2294_s0 = inlined_call_operand.vmem [shape: bf16[512,128], index: 0, kind: input, shape index: {}]   ;;  %s2295_s1 = inlined_call_operand.vmem [shape: bf16[128,128], index: 1, kind: input, shape index: {}]   ;;  %s2296_s2 = inlined_call_operand.vmem [shape: f32[1,128], index: 2, kind: input, shape index: {}]   ;;  %s2297_s3 = inlined_call_operand.vmem [shape: bf16[128,256], index: 3, kind: input, shape index: {}]   ;;  %s2298_s4 = inlined_call_operand.vmem [shape: bf16[128,128], index: 4, kind: input, shape index: {}]   ;;  %s2299_s5 = inlined_call_operand.vmem [shape: f32[512,128], index: 5, kind: output, shape index: {}]  }
   0x1 LB: > { %s1511_s19 = sadd.s32 4294967295, %s1946_s18   ;;  %p1515_p0 = scmp.ge.s32.totalorder %s1946_s18, 1  ;;  %s1946_s18 = sphi %s1979_s18, %s15_s18  }
   0x2   : > { %p188_p1 = scmp.lt.s32.totalorder %s1946_s18, 3 }
   0x4   : > { %p189_p2 = pnand %p1515_p0, %p188_p1 }
   0x5   : > { %s1516_s22 = sshll.u32 (!%p189_p2), %s1511_s19, 5 }
   0x6   : > { %192 = sbr.rel (%p189_p2) target bundleno = 772 (0x304), region = 40  ;;  %p217_p3 = scmp.lt.s32.totalorder (!%p189_p2), %s1516_s22, 63 }
   0xb   : > { %v1756_v0 = vld [vmem:[%s2295_s1 + $0x38] sm:$0xff]   ;;  %v1757_v1 = vld [vmem:[%s2295_s1 + $0x30] sm:$0xff]   ;;  %s2301_s22 = smov (!%p217_p3, %s1516_s22), 63  ;;  %v1758_v2 = vld [vmem:[%s2295_s1 + $0x28] sm:$0xff]   ;;  %v1948_v40 = vmov 0  }
   0xc   : > { %1651 = vmatprep.subr.bf16.mxu0 %v1756_v0  ;;  %s1517_s27 = sshll.u32 %s2301_s22, 2  ;;  %v1759_v3 = vld [vmem:[%s2295_s1 + $0x20] sm:$0xff]   ;;  %v1760_v5 = vld [vmem:[%s2295_s1 + $0x18] sm:$0xff]   ;;  %v1761_v6 = vld [vmem:[%s2295_s1 + $0x10] sm:$0xff]   ;;  %733 = vmatprep.mubr.bf16.mxu1 %v1948_v40  ;;  %s1519_s23 = sshll.u32 %s2301_s22, 3 }
   0xd   : > { %1652 = vmatpush3.bf16.msra.mxu0 %v1756_v0  ;;  %s2002_s30 = scalar_lea.vmem %s2294_s0, %s1517_s27  ;;  %v1762_v7 = vld [vmem:[%s2295_s1 + $0x8] sm:$0xff]   ;;  %v1763_v8 = vld [vmem:[%s2295_s1] sm:$0xff]   ;;  %v1780_v9 = vld [vmem:[%s2297_s3 + $0x74] ss:$8 sps:$4 sm:$0xff]  }
   0xe   : > { %1653 = vmatprep.subr.bf16.mxu0 %v1757_v1  ;;  %v1764_v4 = vld [vmem:[%s2002_s30] sm:$0xff]   ;;  %v1782_v10 = vld [vmem:[%s2297_s3 + $0x70] ss:$8 sps:$4 sm:$0xff]   ;;  %701 = vmatprep.subr.bf16.mxu1 %v1780_v9  ;;  %v1786_v13 = vld [vmem:[%s2297_s3 + $0x54] ss:$8 sps:$4 sm:$0xff]  }
   0xf   : > { %1667 = vmatprep.mubr.bf16.mxu0 %v1764_v4  ;;  %v1783_v11 = vld [vmem:[%s2297_s3 + $0x64] ss:$8 sps:$4 sm:$0xff]   ;;  %702 = vmatpush1.bf16.msra.mxu1 %v1782_v10  ;;  %v1785_v12 = vld [vmem:[%s2297_s3 + $0x60] ss:$8 sps:$4 sm:$0xff]   ;;  %v1766_v15 = vld [vmem:[%s2002_s30 + $0x10] sm:$0xff]  }
  0x10   : > { %703 = vmatprep.subr.bf16.mxu1 %v1783_v11  ;;  %v1765_v14 = vld [vmem:[%s2002_s30 + $0x8] sm:$0xff]   ;;  %v1788_v16 = vld [vmem:[%s2297_s3 + $0x50] ss:$8 sps:$4 sm:$0xff]   ;;  %v1792_v19 = vld [vmem:[%s2297_s3 + $0x34] ss:$8 sps:$4 sm:$0xff]  }
  0x11   : > { %1654 = vmatpush3.bf16.msra.mxu0 %v1757_v1  ;;  %v1789_v17 = vld [vmem:[%s2297_s3 + $0x44] ss:$8 sps:$4 sm:$0xff]   ;;  %v1791_v18 = vld [vmem:[%s2297_s3 + $0x40] ss:$8 sps:$4 sm:$0xff]   ;;  %v1767_v20 = vld [vmem:[%s2002_s30 + $0x18] sm:$0xff]  }
  0x12   : > { %1655 = vmatprep.subr.bf16.mxu0 %v1758_v2  ;;  %v1768_v21 = vld [vmem:[%s2002_s30 + $0x20] sm:$0xff]   ;;  %v1794_v22 = vld [vmem:[%s2297_s3 + $0x30] ss:$8 sps:$4 sm:$0xff]   ;;  %v1769_v24 = vld [vmem:[%s2002_s30 + $0x28] sm:$0xff]  }
  0x13   : > { %704 = vmatpush1.bf16.msra.mxu1 %v1785_v12  ;;  %v1795_v23 = vld [vmem:[%s2297_s3 + $0x24] ss:$8 sps:$4 sm:$0xff]   ;;  %v1770_v25 = vld [vmem:[%s2002_s30 + $0x30] sm:$0xff]   ;;  %v1771_v26 = vld [vmem:[%s2002_s30 + $0x38] sm:$0xff]  }
  0x14   : > { %705 = vmatprep.subr.bf16.mxu1 %v1786_v13  ;;  %v1772_v27 = vld [vmem:[%s2002_s30 + $0x40] sm:$0xff]   ;;  %v1773_v28 = vld [vmem:[%s2002_s30 + $0x48] sm:$0xff]   ;;  %v1774_v29 = vld [vmem:[%s2002_s30 + $0x50] sm:$0xff]  }
  0x15   : > { %1656 = vmatpush3.bf16.msra.mxu0 %v1758_v2  ;;  %v1775_v30 = vld [vmem:[%s2002_s30 + $0x58] sm:$0xff]   ;;  %v1776_v31 = vld [vmem:[%s2002_s30 + $0x60] sm:$0xff]   ;;  %v1777_v32 = vld [vmem:[%s2002_s30 + $0x68] sm:$0xff]  }
  0x16   : > { %1657 = vmatprep.subr.bf16.mxu0 %v1759_v3  ;;  %v1778_v33 = vld [vmem:[%s2002_s30 + $0x70] sm:$0xff]   ;;  %v1779_v34 = vld [vmem:[%s2002_s30 + $0x78] sm:$0xff]   ;;  %v1797_v35 = vld [vmem:[%s2297_s3 + $0x20] ss:$8 sps:$4 sm:$0xff]   ;;  %s2237_s30 = scalar_lea.vmem %s2299_s5, %s1519_s23 }
  0x17   : > { %706 = vmatpush1.bf16.msra.mxu1 %v1788_v16  ;;  %v1798_v36 = vld [vmem:[%s2297_s3 + $0x14] ss:$8 sps:$4 sm:$0xff]   ;;  %v1800_v37 = vld [vmem:[%s2297_s3 + $0x10] ss:$8 sps:$4 sm:$0xff]   ;;  %v1801_v38 = vld [vmem:[%s2297_s3 + $0x4] ss:$8 sps:$4 sm:$0xff]  }
  0x18   : > { %707 = vmatprep.subr.bf16.mxu1 %v1789_v17  ;;  %v1803_v39 = vld [vmem:[%s2297_s3] ss:$8 sps:$4 sm:$0xff]   ;;  %v1804_v43 = vld [vmem:[%s2298_s4 + $0x38] sm:$0xff]   ;;  %v1805_v44 = vld [vmem:[%s2298_s4 + $0x30] sm:$0xff]  }
  0x19   : > { %1658 = vmatpush3.bf16.msra.mxu0 %v1759_v3  ;;  %v2093_v46 = vld [vmem:[%s2296_s2] ss:$0 sm:$0xff]  ;;  %v1806_v50 = vld [vmem:[%s2298_s4 + $0x28] sm:$0xff]  }
  0x1a   : > { %1659 = vmatprep.subr.bf16.mxu0 %v1760_v5  ;;  %v1807_v54 = vld [vmem:[%s2298_s4 + $0x20] sm:$0xff]  }
  0x1b   : > { %708 = vmatpush1.bf16.msra.mxu1 %v1791_v18 }
  0x1c   : > { %709 = vmatprep.subr.bf16.mxu1 %v1792_v19 }
  0x1d   : > { %1660 = vmatpush3.bf16.msra.mxu0 %v1760_v5 }
  0x1e   : > { %1661 = vmatprep.subr.bf16.mxu0 %v1761_v6 }
  0x1f   : > { %710 = vmatpush1.bf16.msra.mxu1 %v1794_v22 }
  0x20   : > { %711 = vmatprep.subr.bf16.mxu1 %v1795_v23 }
  0x21   : > { %1662 = vmatpush3.bf16.msra.mxu0 %v1761_v6 }
  0x22   : > { %1663 = vmatprep.subr.bf16.mxu0 %v1762_v7 }
  0x23   : > { %712 = vmatpush1.bf16.msra.mxu1 %v1797_v35  ;;  %v1809_v35 = vld [vmem:[%s2298_s4 + $0x10] sm:$0xff]  }
  0x24   : > { %713 = vmatprep.subr.bf16.mxu1 %v1798_v36 }
  0x25   : > { %1664 = vmatpush3.bf16.msra.mxu0 %v1762_v7 }
  0x26   : > { %1665 = vmatprep.subr.bf16.mxu0 %v1763_v8 }
  0x27   : > { %714 = vmatpush1.bf16.msra.mxu1 %v1800_v37 }
  0x28   : > { %715 = vmatprep.subr.bf16.mxu1 %v1801_v38  ;;  %v1810_v38 = vld [vmem:[%s2298_s4 + $0x8] sm:$0xff]  }
  0x29   : > { %1666 = vmatpush3.bf16.msra.mxu0 %v1763_v8 }
  0x2a   : > { %1699 = vmatprep.subr.bf16.mxu0 %v1804_v43 }
  0x2b   : > { %716 = vmatpush1.bf16.msra.mxu1 %v1803_v39 }
  0x2c   : > { %1668 = vmatmul.mubr.bf16.vlgmr.msra.gmra.mxu0 %v1765_v14 }
  0x2d   : > { %1671 = vmatprep.mubr.bf16.mxu0 %v1766_v15  ;;  %1700 = vmatpush3.bf16.msra.mxu0 %v1804_v43  ;;  %v1811_v43 = vld [vmem:[%s2298_s4] sm:$0xff]  }
  0x2e   : > { %1701 = vmatprep.subr.bf16.mxu0 %v1805_v44 }
  0x31   : > { %1702 = vmatpush3.bf16.msra.mxu0 %v1805_v44 }
  0x32   : > { %1703 = vmatprep.subr.bf16.mxu0 %v1806_v50 }
  0x34   : > { %1672 = vmatmul.mubr.bf16.gmra.mxu0 %v1767_v20 }
  0x35   : > { %1675 = vmatprep.mubr.bf16.mxu0 %v1768_v21  ;;  %1704 = vmatpush3.bf16.msra.mxu0 %v1806_v50 }
  0x36   : > { %1705 = vmatprep.subr.bf16.mxu0 %v1807_v54 }
  0x39   : > { %1706 = vmatpush3.bf16.msra.mxu0 %v1807_v54 }
  0x3c   : > { %1676 = vmatmul.mubr.bf16.gmra.mxu0 %v1769_v24 }
  0x3d   : > { %1679 = vmatprep.mubr.bf16.mxu0 %v1770_v25 }
  0x44   : > { %1680 = vmatmul.mubr.bf16.gmra.mxu0 %v1771_v26 }
  0x45   : > { %1683 = vmatprep.mubr.bf16.mxu0 %v1772_v27 }
  0x4c   : > { %1684 = vmatmul.mubr.bf16.gmra.mxu0 %v1773_v28 }
  0x4d   : > { %1687 = vmatprep.mubr.bf16.mxu0 %v1774_v29 }
  0x54   : > { %1688 = vmatmul.mubr.bf16.gmra.mxu0 %v1775_v30 }
  0x55   : > { %1691 = vmatprep.mubr.bf16.mxu0 %v1776_v31  ;;  %v1808_v31 = vld [vmem:[%s2298_s4 + $0x18] sm:$0xff]  }
  0x56   : > { %1707 = vmatprep.subr.bf16.mxu0 %v1808_v31 }
  0x57   : > { %1708 = vmatpush3.bf16.msra.mxu0 %v1808_v31 }
  0x58   : > { %1709 = vmatprep.subr.bf16.mxu0 %v1809_v35 }
  0x5b   : > { %1710 = vmatpush3.bf16.msra.mxu0 %v1809_v35 }
  0x5c   : > { %1692 = vmatmul.mubr.bf16.gmra.mxu0 %v1777_v32  ;;  %1711 = vmatprep.subr.bf16.mxu0 %v1810_v38 }
  0x5d   : > { %1695 = vmatprep.mubr.bf16.mxu0 %v1778_v33 }
  0x5f   : > { %1712 = vmatpush3.bf16.msra.mxu0 %v1810_v38 }
  0x60   : > { %1713 = vmatprep.subr.bf16.mxu0 %v1811_v43 }
  0x63   : > { %1714 = vmatpush3.bf16.msra.mxu0 %v1811_v43 }
  0x64   : > { %1696 = vmatmul.mubr.bf16.gmra.mxu0 %v1779_v34 }
  0xec   : > { %v1669_v41 = vpop.f32.mrf.mxu0 }
  0xed   : > { %v471_v57 = vadd.f32 %v1669_v41, %v2093_v46 }
  0xee   : > { %v462_v42 = vpop.f32.mrf.mxu0 }
  0xef   : > { %v463_v48 = vadd.f32 %v2093_v46, %v462_v42 }
  0xf0   : > { %v1670_v45 = vpop.f32.mrf.mxu0 }
  0xf1   : > { %v474_v55 = vadd.f32 %v1670_v45, %v2093_v46 }
  0xf2   : > { %v465_v47 = vpop.f32.mrf.mxu0 }
  0xf3   : > { %v466_v49 = vadd.f32 %v2093_v46, %v465_v47  ;;  %v590_v58 = vpack.c.bf16 %v474_v55, %v471_v57 }
  0xf4   : > { %v1673_v51 = vpop.f32.mrf.mxu0 }
  0xf5   : > { %v589_v52 = vpack.c.bf16 %v466_v49, %v463_v48  ;;  %v487_v1 = vadd.f32 %v1673_v51, %v2093_v46 }
  0xf6   : > { %v478_v53 = vpop.f32.mrf.mxu0 }
  0xf7   : > { %734 = vmatmul.mubr.bf16.vlgmr.msra.gmra.mxu1 %v589_v52  ;;  %v479_v60 = vadd.f32 %v2093_v46, %v478_v53 }
  0xf8   : > { %743 = vmatprep.mubr.bf16.mxu1 %v1948_v40  ;;  %v1674_v56 = vpop.f32.mrf.mxu0 }
  0xf9   : > { %v490_v2 = vadd.f32 %v1674_v56, %v2093_v46 }
  0xfa   : > { %v481_v59 = vpop.f32.mrf.mxu0 }
  0xfb   : > { %v482_v61 = vadd.f32 %v2093_v46, %v481_v59  ;;  %v592_v4 = vpack.c.bf16 %v490_v2, %v487_v1 }
  0xfc   : > { %v1677_v62 = vpop.f32.mrf.mxu0 }
  0xfd   : > { %v591_v63 = vpack.c.bf16 %v482_v61, %v479_v60  ;;  %v503_v11 = vadd.f32 %v1677_v62, %v2093_v46 }
  0xfe   : > { %v494_v0 = vpop.f32.mrf.mxu0 }
  0xff   : > { %744 = vmatmul.mubr.bf16.gmra.mxu1 %v590_v58  ;;  %v495_v6 = vadd.f32 %v2093_v46, %v494_v0 }
 0x100   : > { %753 = vmatprep.mubr.bf16.mxu1 %v1948_v40  ;;  %v1678_v3 = vpop.f32.mrf.mxu0 }
 0x101   : > { %v506_v12 = vadd.f32 %v1678_v3, %v2093_v46 }
 0x102   : > { %v497_v5 = vpop.f32.mrf.mxu0 }
 0x103   : > { %v498_v7 = vadd.f32 %v2093_v46, %v497_v5  ;;  %v594_v14 = vpack.c.bf16 %v506_v12, %v503_v11 }
 0x104   : > { %v1681_v8 = vpop.f32.mrf.mxu0 }
 0x105   : > { %v593_v9 = vpack.c.bf16 %v498_v7, %v495_v6  ;;  %v519_v21 = vadd.f32 %v1681_v8, %v2093_v46 }
 0x106   : > { %v510_v10 = vpop.f32.mrf.mxu0 }
 0x107   : > { %754 = vmatmul.mubr.bf16.gmra.mxu1 %v591_v63  ;;  %v511_v16 = vadd.f32 %v2093_v46, %v510_v10 }
 0x108   : > { %763 = vmatprep.mubr.bf16.mxu1 %v1948_v40  ;;  %v1682_v13 = vpop.f32.mrf.mxu0 }
 0x109   : > { %v522_v22 = vadd.f32 %v1682_v13, %v2093_v46 }
 0x10a   : > { %v513_v15 = vpop.f32.mrf.mxu0 }
 0x10b   : > { %v514_v17 = vadd.f32 %v2093_v46, %v513_v15  ;;  %v596_v24 = vpack.c.bf16 %v522_v22, %v519_v21 }
 0x10c   : > { %v1685_v18 = vpop.f32.mrf.mxu0 }
 0x10d   : > { %v595_v19 = vpack.c.bf16 %v514_v17, %v511_v16  ;;  %v535_v32 = vadd.f32 %v1685_v18, %v2093_v46 }
 0x10e   : > { %v526_v20 = vpop.f32.mrf.mxu0 }
 0x10f   : > { %764 = vmatmul.mubr.bf16.gmra.mxu1 %v592_v4  ;;  %v527_v26 = vadd.f32 %v2093_v46, %v526_v20 }
 0x110   : > { %773 = vmatprep.mubr.bf16.mxu1 %v1948_v40  ;;  %v1686_v23 = vpop.f32.mrf.mxu0 }
 0x111   : > { %v538_v33 = vadd.f32 %v1686_v23, %v2093_v46 }
 0x112   : > { %v529_v25 = vpop.f32.mrf.mxu0 }
 0x113   : > { %v530_v27 = vadd.f32 %v2093_v46, %v529_v25  ;;  %v598_v36 = vpack.c.bf16 %v538_v33, %v535_v32 }
 0x114   : > { %v1689_v28 = vpop.f32.mrf.mxu0 }
 0x115   : > { %v597_v29 = vpack.c.bf16 %v530_v27, %v527_v26  ;;  %v551_v47 = vadd.f32 %v1689_v28, %v2093_v46 }
 0x116   : > { %v542_v30 = vpop.f32.mrf.mxu0 }
 0x117   : > { %774 = vmatmul.mubr.bf16.gmra.mxu1 %v593_v9  ;;  %v543_v39 = vadd.f32 %v2093_v46, %v542_v30 }
 0x118   : > { %783 = vmatprep.mubr.bf16.mxu1 %v1948_v40  ;;  %v1690_v34 = vpop.f32.mrf.mxu0 }
 0x119   : > { %v554_v48 = vadd.f32 %v1690_v34, %v2093_v46 }
 0x11a   : > { %v545_v37 = vpop.f32.mrf.mxu0 }
 0x11b   : > { %v546_v41 = vadd.f32 %v2093_v46, %v545_v37  ;;  %v600_v50 = vpack.c.bf16 %v554_v48, %v551_v47 }
 0x11c   : > { %v1693_v42 = vpop.f32.mrf.mxu0 }
 0x11d   : > { %v599_v44 = vpack.c.bf16 %v546_v41, %v543_v39  ;;  %v567_v57 = vadd.f32 %v1693_v42, %v2093_v46 }
 0x11e   : > { %v558_v45 = vpop.f32.mrf.mxu0 }
 0x11f   : > { %784 = vmatmul.mubr.bf16.gmra.mxu1 %v594_v14  ;;  %v559_v52 = vadd.f32 %v2093_v46, %v558_v45 }
 0x120   : > { %793 = vmatprep.mubr.bf16.mxu1 %v1948_v40  ;;  %v1694_v49 = vpop.f32.mrf.mxu0 }
 0x121   : > { %v570_v58 = vadd.f32 %v1694_v49, %v2093_v46 }
 0x122   : > { %v561_v51 = vpop.f32.mrf.mxu0 }
 0x123   : > { %v562_v53 = vadd.f32 %v2093_v46, %v561_v51  ;;  %v602_v60 = vpack.c.bf16 %v570_v58, %v567_v57 }
 0x124   : > { %v1697_v54 = vpop.f32.mrf.mxu0 }
 0x125   : > { %v601_v55 = vpack.c.bf16 %v562_v53, %v559_v52  ;;  %v583_v1 = vadd.f32 %v1697_v54, %v2093_v46 }
 0x126   : > { %v574_v56 = vpop.f32.mrf.mxu0 }
 0x127   : > { %794 = vmatmul.mubr.bf16.gmra.mxu1 %v595_v19  ;;  %v575_v62 = vadd.f32 %v2093_v46, %v574_v56 }
 0x128   : > { %803 = vmatprep.mubr.bf16.mxu1 %v1948_v40  ;;  %v1698_v59 = vpop.f32.mrf.mxu0 }
 0x129   : > { %v586_v2 = vadd.f32 %v1698_v59, %v2093_v46 }
 0x12a   : > { %v577_v61 = vpop.f32.mrf.mxu0 }
 0x12b   : > { %v578_v63 = vadd.f32 %v2093_v46, %v577_v61  ;;  %v604_v3 = vpack.c.bf16 %v586_v2, %v583_v1 }
 0x12d   : > { %v603_v0 = vpack.c.bf16 %v578_v63, %v575_v62 }
 0x12f   : > { %804 = vmatmul.mubr.bf16.gmra.mxu1 %v596_v24 }
 0x130   : > { %813 = vmatprep.mubr.bf16.mxu1 %v1948_v40 }
 0x137   : > { %814 = vmatmul.mubr.bf16.gmra.mxu1 %v597_v29 }
 0x138   : > { %823 = vmatprep.mubr.bf16.mxu1 %v1948_v40 }
 0x13f   : > { %824 = vmatmul.mubr.bf16.gmra.mxu1 %v598_v36 }
 0x140   : > { %833 = vmatprep.mubr.bf16.mxu1 %v1948_v40 }
 0x147   : > { %834 = vmatmul.mubr.bf16.gmra.mxu1 %v599_v44 }
 0x148   : > { %843 = vmatprep.mubr.bf16.mxu1 %v1948_v40 }
 0x14f   : > { %844 = vmatmul.mubr.bf16.gmra.mxu1 %v600_v50 }
 0x150   : > { %853 = vmatprep.mubr.bf16.mxu1 %v1948_v40 }
 0x157   : > { %854 = vmatmul.mubr.bf16.gmra.mxu1 %v601_v55 }
 0x158   : > { %863 = vmatprep.mubr.bf16.mxu1 %v1948_v40 }
 0x15f   : > { %864 = vmatmul.mubr.bf16.gmra.mxu1 %v602_v60 }
 0x160   : > { %873 = vmatprep.mubr.bf16.mxu1 %v1948_v40 }
 0x167   : > { %874 = vmatmul.mubr.bf16.gmra.mxu1 %v603_v0 }
 0x168   : > { %883 = vmatprep.mubr.bf16.mxu1 %v1948_v40 }
 0x16f   : > { %884 = vmatmul.mubr.bf16.gmra.mxu1 %v604_v3 }
 0x1b7   : > { %v735_v4 = vpop.f32.mrf.mxu1 }
 0x1b8   : > { %v894_v6 = vmax.f32 %v735_v4, 0.0 }
 0x1b9   : > { %v2160_v5 = vpop.f32.mrf.mxu1 }
 0x1ba   : > { %v926_v10 = vmul.f32 %v894_v6, %v894_v6 }
 0x1bb   : > { %v739_v7 = vpop.f32.mrf.mxu1 }
 0x1bc   : > { %v895_v8 = vmax.f32 %v739_v7, 0.0 }
 0x1bd   : > { %v2162_v9 = vpop.f32.mrf.mxu1 }
 0x1be   : > { %v927_v11 = vmul.f32 %v895_v8, %v895_v8 }
 0x1bf   : > { %v745_v12 = vpop.f32.mrf.mxu1 }
 0x1c0   : > { %v958_v13 = vpack.c.bf16 %v927_v11, %v926_v10  ;;  %v896_v40 = vmax.f32 %v745_v12, 0.0 }
 0x1c1   : > { %v2164_v14 = vpop.f32.mrf.mxu1 }
 0x1c2   : > { %1715 = vmatprep.mubr.bf16.mxu0 %v958_v13  ;;  %v928_v17 = vmul.f32 %v896_v40, %v896_v40 }
 0x1c3   : > { %v749_v15 = vpop.f32.mrf.mxu1 }
 0x1c4   : > { %v897_v46 = vmax.f32 %v749_v15, 0.0 }
 0x1c5   : > { %v2166_v16 = vpop.f32.mrf.mxu1 }
 0x1c6   : > { %v929_v18 = vmul.f32 %v897_v46, %v897_v46 }
 0x1c7   : > { %v755_v19 = vpop.f32.mrf.mxu1 }
 0x1c8   : > { %v959_v20 = vpack.c.bf16 %v929_v18, %v928_v17  ;;  %v898_v22 = vmax.f32 %v755_v19, 0.0 }
 0x1c9   : > { %v2168_v21 = vpop.f32.mrf.mxu1 }
 0x1ca   : > { %1716 = vmatmul.mubr.bf16.vlgmr.msra.gmra.mxu0 %v959_v20  ;;  %v930_v26 = vmul.f32 %v898_v22, %v898_v22 }
 0x1cb   : > { %v759_v23 = vpop.f32.mrf.mxu1 }
 0x1cc   : > { %v899_v24 = vmax.f32 %v759_v23, 0.0 }
 0x1cd   : > { %v2170_v25 = vpop.f32.mrf.mxu1 }
 0x1ce   : > { %v931_v27 = vmul.f32 %v899_v24, %v899_v24 }
 0x1cf   : > { %v765_v28 = vpop.f32.mrf.mxu1 }
 0x1d0   : > { %v960_v29 = vpack.c.bf16 %v931_v27, %v930_v26  ;;  %v900_v31 = vmax.f32 %v765_v28, 0.0 }
 0x1d1   : > { %v2172_v30 = vpop.f32.mrf.mxu1 }
 0x1d2   : > { %1719 = vmatprep.mubr.bf16.mxu0 %v960_v29  ;;  %v932_v35 = vmul.f32 %v900_v31, %v900_v31 }
 0x1d3   : > { %v769_v32 = vpop.f32.mrf.mxu1 }
 0x1d4   : > { %v901_v33 = vmax.f32 %v769_v32, 0.0 }
 0x1d5   : > { %v2174_v34 = vpop.f32.mrf.mxu1 }
 0x1d6   : > { %v933_v36 = vmul.f32 %v901_v33, %v901_v33 }
 0x1d7   : > { %v775_v37 = vpop.f32.mrf.mxu1 }
 0x1d8   : > { %v961_v38 = vpack.c.bf16 %v933_v36, %v932_v35  ;;  %v902_v41 = vmax.f32 %v775_v37, 0.0 }
 0x1d9   : > { %v2176_v39 = vpop.f32.mrf.mxu1 }
 0x1da   : > { %1720 = vmatmul.mubr.bf16.gmra.mxu0 %v961_v38  ;;  %v934_v45 = vmul.f32 %v902_v41, %v902_v41 }
 0x1db   : > { %v779_v42 = vpop.f32.mrf.mxu1 }
 0x1dc   : > { %v903_v43 = vmax.f32 %v779_v42, 0.0 }
 0x1dd   : > { %v2178_v44 = vpop.f32.mrf.mxu1 }
 0x1de   : > { %v935_v47 = vmul.f32 %v903_v43, %v903_v43 }
 0x1df   : > { %v785_v48 = vpop.f32.mrf.mxu1 }
 0x1e0   : > { %v962_v49 = vpack.c.bf16 %v935_v47, %v934_v45  ;;  %v904_v51 = vmax.f32 %v785_v48, 0.0 }
 0x1e1   : > { %v2180_v50 = vpop.f32.mrf.mxu1 }
 0x1e2   : > { %1723 = vmatprep.mubr.bf16.mxu0 %v962_v49  ;;  %v936_v55 = vmul.f32 %v904_v51, %v904_v51 }
 0x1e3   : > { %v789_v52 = vpop.f32.mrf.mxu1 }
 0x1e4   : > { %v905_v53 = vmax.f32 %v789_v52, 0.0 }
 0x1e5   : > { %v2182_v54 = vpop.f32.mrf.mxu1 }
 0x1e6   : > { %v937_v56 = vmul.f32 %v905_v53, %v905_v53 }
 0x1e7   : > { %v795_v57 = vpop.f32.mrf.mxu1 }
 0x1e8   : > { %v963_v58 = vpack.c.bf16 %v937_v56, %v936_v55  ;;  %v906_v60 = vmax.f32 %v795_v57, 0.0 }
 0x1e9   : > { %v2184_v59 = vpop.f32.mrf.mxu1 }
 0x1ea   : > { %1724 = vmatmul.mubr.bf16.gmra.mxu0 %v963_v58  ;;  %v938_v0 = vmul.f32 %v906_v60, %v906_v60 }
 0x1eb   : > { %v799_v61 = vpop.f32.mrf.mxu1 }
 0x1ec   : > { %v907_v62 = vmax.f32 %v799_v61, 0.0 }
 0x1ed   : > { %v2186_v63 = vpop.f32.mrf.mxu1 }
 0x1ee   : > { %v939_v1 = vmul.f32 %v907_v62, %v907_v62 }
 0x1ef   : > { %v805_v2 = vpop.f32.mrf.mxu1 }
 0x1f0   : > { %v964_v3 = vpack.c.bf16 %v939_v1, %v938_v0  ;;  %v908_v6 = vmax.f32 %v805_v2, 0.0 }
 0x1f1   : > { %v2188_v4 = vpop.f32.mrf.mxu1 }
 0x1f2   : > { %1727 = vmatprep.mubr.bf16.mxu0 %v964_v3  ;;  %v940_v11 = vmul.f32 %v908_v6, %v908_v6 }
 0x1f3   : > { %v809_v7 = vpop.f32.mrf.mxu1 }
 0x1f4   : > { %v909_v8 = vmax.f32 %v809_v7, 0.0 }
 0x1f5   : > { %v2190_v10 = vpop.f32.mrf.mxu1 }
 0x1f6   : > { %v941_v12 = vmul.f32 %v909_v8, %v909_v8 }
 0x1f7   : > { %v815_v13 = vpop.f32.mrf.mxu1 }
 0x1f8   : > { %v965_v40 = vpack.c.bf16 %v941_v12, %v940_v11  ;;  %v910_v46 = vmax.f32 %v815_v13, 0.0 }
 0x1f9   : > { %v2192_v15 = vpop.f32.mrf.mxu1 }
 0x1fa   : > { %1728 = vmatmul.mubr.bf16.gmra.mxu0 %v965_v40  ;;  %v942_v20 = vmul.f32 %v910_v46, %v910_v46 }
 0x1fb   : > { %v819_v17 = vpop.f32.mrf.mxu1 }
 0x1fc   : > { %v911_v18 = vmax.f32 %v819_v17, 0.0 }
 0x1fd   : > { %v2194_v19 = vpop.f32.mrf.mxu1 }
 0x1fe   : > { %v943_v22 = vmul.f32 %v911_v18, %v911_v18 }
 0x1ff   : > { %v825_v23 = vpop.f32.mrf.mxu1 }
 0x200   : > { %v966_v24 = vpack.c.bf16 %v943_v22, %v942_v20  ;;  %v912_v27 = vmax.f32 %v825_v23, 0.0 }
 0x201   : > { %v2196_v26 = vpop.f32.mrf.mxu1 }
 0x202   : > { %1731 = vmatprep.mubr.bf16.mxu0 %v966_v24  ;;  %v944_v32 = vmul.f32 %v912_v27, %v912_v27 }
 0x203   : > { %v829_v28 = vpop.f32.mrf.mxu1 }
 0x204   : > { %v913_v29 = vmax.f32 %v829_v28, 0.0 }
 0x205   : > { %v2198_v31 = vpop.f32.mrf.mxu1 }
 0x206   : > { %v945_v33 = vmul.f32 %v913_v29, %v913_v29 }
 0x207   : > { %v835_v35 = vpop.f32.mrf.mxu1 }
 0x208   : > { %v967_v36 = vpack.c.bf16 %v945_v33, %v944_v32  ;;  %v914_v38 = vmax.f32 %v835_v35, 0.0 }
 0x209   : > { %v2200_v37 = vpop.f32.mrf.mxu1 }
 0x20a   : > { %1732 = vmatmul.mubr.bf16.gmra.mxu0 %v967_v36  ;;  %v946_v45 = vmul.f32 %v914_v38, %v914_v38 }
 0x20b   : > { %v839_v41 = vpop.f32.mrf.mxu1 }
 0x20c   : > { %v915_v42 = vmax.f32 %v839_v41, 0.0 }
 0x20d   : > { %v2202_v43 = vpop.f32.mrf.mxu1 }
 0x20e   : > { %v947_v47 = vmul.f32 %v915_v42, %v915_v42 }
 0x20f   : > { %v845_v48 = vpop.f32.mrf.mxu1 }
 0x210   : > { %v968_v49 = vpack.c.bf16 %v947_v47, %v946_v45  ;;  %v916_v52 = vmax.f32 %v845_v48, 0.0 }
 0x211   : > { %v2204_v51 = vpop.f32.mrf.mxu1 }
 0x212   : > { %1735 = vmatprep.mubr.bf16.mxu0 %v968_v49  ;;  %v948_v57 = vmul.f32 %v916_v52, %v916_v52 }
 0x213   : > { %v849_v53 = vpop.f32.mrf.mxu1 }
 0x214   : > { %v917_v55 = vmax.f32 %v849_v53, 0.0  ;;  %v1571_v53 = vmul.f32 -1.442695, %v2164_v14  ;;  %v1576_v14 = vmul.f32 -1.442695, %v2174_v34 }
 0x215   : > { %v2206_v56 = vpop.f32.mrf.mxu1  ;;  %v1577_v34 = vmul.f32 -1.442695, %v2176_v39  ;;  %v1578_v39 = vmul.f32 -1.442695, %v2178_v44 }
 0x216   : > { %v949_v58 = vmul.f32 %v917_v55, %v917_v55  ;;  %v1569_v55 = vmul.f32 -1.442695, %v2160_v5  ;;  %1812 = vpow2.f32 %v1571_v53 }
 0x217   : > { %v855_v60 = vpop.f32.mrf.mxu1 }
 0x218   : > { %v969_v61 = vpack.c.bf16 %v949_v58, %v948_v57  ;;  %v918_v0 = vmax.f32 %v855_v60, 0.0  ;;  %v1572_v57 = vmul.f32 -1.442695, %v2166_v16  ;;  %1814 = vpow2.f32 %v1569_v55 }
 0x219   : > { %v2208_v62 = vpop.f32.mrf.mxu1  ;;  %v1570_v58 = vmul.f32 -1.442695, %v2162_v9  ;;  %v1575_v60 = vmul.f32 -1.442695, %v2172_v30  ;;  %v1574_v16 = vmul.f32 -1.442695, %v2170_v25 }
 0x21a   : > { %1736 = vmatmul.mubr.bf16.gmra.mxu0 %v969_v61  ;;  %v950_v6 = vmul.f32 %v918_v0, %v918_v0  ;;  %1816 = vpow2.f32 %v1572_v57  ;;  %v1573_v0 = vmul.f32 -1.442695, %v2168_v21  ;;  %v1579_v21 = vmul.f32 -1.442695, %v2180_v50 }
 0x21b   : > { %v859_v1 = vpop.f32.mrf.mxu1  ;;  %1818 = vpow2.f32 %v1570_v58  ;;  %v1580_v25 = vmul.f32 -1.442695, %v2182_v54  ;;  %v1584_v55 = vmul.f32 -1.442695, %v2190_v10 }
 0x21c   : > { %v919_v2 = vmax.f32 %v859_v1, 0.0  ;;  %1820 = vpow2.f32 %v1575_v60 }
 0x21d   : > { %v2210_v3 = vpop.f32.mrf.mxu1  ;;  %1822 = vpow2.f32 %v1573_v0  ;;  %v1582_v0 = vmul.f32 -1.442695, %v2186_v63 }
 0x21e   : > { %v951_v7 = vmul.f32 %v919_v2, %v919_v2 }
 0x21f   : > { %v865_v8 = vpop.f32.mrf.mxu1 }
 0x220   : > { %v970_v11 = vpack.c.bf16 %v951_v7, %v950_v6  ;;  %v920_v13 = vmax.f32 %v865_v8, 0.0 }
 0x221   : > { %v2212_v12 = vpop.f32.mrf.mxu1 }
 0x222   : > { %1739 = vmatprep.mubr.bf16.mxu0 %v970_v11  ;;  %v952_v18 = vmul.f32 %v920_v13, %v920_v13 }
 0x223   : > { %v869_v40 = vpop.f32.mrf.mxu1  ;;  %v1813_v61 = vpop.eup %1812 }
 0x224   : > { %v921_v46 = vmax.f32 %v869_v40, 0.0  ;;  %v1297_v2 = vadd.f32 1.0, %v1813_v61 }
 0x225   : > { %v2214_v17 = vpop.f32.mrf.mxu1  ;;  %v1815_v1 = vpop.eup %1814 }
 0x226   : > { %v953_v20 = vmul.f32 %v921_v46, %v921_v46  ;;  %v1295_v5 = vadd.f32 1.0, %v1815_v1  ;;  %1824 = vrcp.f32 %v1297_v2 }
 0x227   : > { %v875_v22 = vpop.f32.mrf.mxu1  ;;  %v1817_v6 = vpop.eup %1816  ;;  %1826 = vpow2.f32 %v1576_v14 }
 0x228   : > { %v971_v23 = vpack.c.bf16 %v953_v20, %v952_v18  ;;  %v922_v27 = vmax.f32 %v875_v22, 0.0  ;;  %v1819_v7 = vpop.eup %1818  ;;  %v1298_v9 = vadd.f32 1.0, %v1817_v6  ;;  %1828 = vrcp.f32 %v1295_v5 }
 0x229   : > { %v2216_v24 = vpop.f32.mrf.mxu1  ;;  %v1296_v30 = vadd.f32 1.0, %v1819_v7  ;;  %1830 = vpow2.f32 %v1574_v16  ;;  %v1821_v8 = vpop.eup %1820 }
 0x22a   : > { %1740 = vmatmul.mubr.bf16.gmra.mxu0 %v971_v23  ;;  %v954_v33 = vmul.f32 %v922_v27, %v922_v27  ;;  %1832 = vrcp.f32 %v1298_v9  ;;  %v1823_v11 = vpop.eup %1822  ;;  %v1301_v13 = vadd.f32 1.0, %v1821_v8  ;;  %v1585_v8 = vmul.f32 -1.442695, %v2192_v15 }
 0x22b   : > { %v879_v28 = vpop.f32.mrf.mxu1  ;;  %1834 = vrcp.f32 %v1296_v30  ;;  %v1299_v18 = vadd.f32 1.0, %v1823_v11  ;;  %v1587_v30 = vmul.f32 -1.442695, %v2196_v26 }
 0x22c   : > { %v923_v29 = vmax.f32 %v879_v28, 0.0  ;;  %1836 = vpow2.f32 %v1579_v21 }
 0x22d   : > { %v2218_v32 = vpop.f32.mrf.mxu1  ;;  %1838 = vpow2.f32 %v1577_v34 }
 0x22e   : > { %v955_v35 = vmul.f32 %v923_v29, %v923_v29  ;;  %1840 = vrcp.f32 %v1301_v13 }
 0x22f   : > { %v885_v36 = vpop.f32.mrf.mxu1  ;;  %1842 = vpow2.f32 %v1580_v25 }
 0x230   : > { %v972_v38 = vpack.c.bf16 %v955_v35, %v954_v33  ;;  %v924_v42 = vmax.f32 %v885_v36, 0.0  ;;  %1844 = vrcp.f32 %v1299_v18 }
 0x231   : > { %v2220_v41 = vpop.f32.mrf.mxu1  ;;  %1846 = vpow2.f32 %v1578_v39 }
 0x232   : > { %1743 = vmatprep.mubr.bf16.mxu0 %v972_v38  ;;  %v956_v48 = vmul.f32 %v924_v42, %v924_v42 }
 0x233   : > { %v889_v45 = vpop.f32.mrf.mxu1  ;;  %v1825_v40 = vpop.eup %1824 }
 0x234   : > { %v925_v47 = vmax.f32 %v889_v45, 0.0  ;;  %v1827_v46 = vpop.eup %1826  ;;  %v1583_v45 = vmul.f32 -1.442695, %v2188_v4 }
 0x235   : > { %v1829_v20 = vpop.eup %1828  ;;  %v1302_v54 = vadd.f32 1.0, %v1827_v46 }
 0x236   : > { %v957_v49 = vmul.f32 %v925_v47, %v925_v47  ;;  %v1831_v23 = vpop.eup %1830 }
 0x237   : > { %v1833_v29 = vpop.eup %1832  ;;  %v1300_v35 = vadd.f32 1.0, %v1831_v23  ;;  %1848 = vrcp.f32 %v1302_v54 }
 0x238   : > { %v973_v52 = vpack.c.bf16 %v957_v49, %v956_v48  ;;  %v1835_v38 = vpop.eup %1834  ;;  %v1581_v48 = vmul.f32 -1.442695, %v2184_v59 }
 0x239   : > { %1850 = vrcp.f32 %v1300_v35  ;;  %v1837_v47 = vpop.eup %1836  ;;  %v1591_v35 = vmul.f32 -1.442695, %v2204_v51 }
 0x23a   : > { %1744 = vmatmul.mubr.bf16.gmra.mxu0 %v973_v52  ;;  %v1839_v49 = vpop.eup %1838  ;;  %v1305_v52 = vadd.f32 1.0, %v1837_v47  ;;  %1852 = vpow2.f32 %v1583_v45  ;;  %v1592_v47 = vmul.f32 -1.442695, %v2206_v56 }
 0x23b   : > { %v1841_v53 = vpop.eup %1840  ;;  %v1303_v58 = vadd.f32 1.0, %v1839_v49  ;;  %1854 = vpow2.f32 %v1581_v48 }
 0x23c   : > { %v1843_v57 = vpop.eup %1842  ;;  %1856 = vrcp.f32 %v1305_v52 }
 0x23d   : > { %v1845_v61 = vpop.eup %1844  ;;  %v1306_v2 = vadd.f32 1.0, %v1843_v57  ;;  %1858 = vpow2.f32 %v1584_v55  ;;  %v1590_v55 = vmul.f32 -1.442695, %v2202_v43 }
 0x23e   : > { %v1847_v4 = vpop.eup %1846  ;;  %1860 = vrcp.f32 %v1303_v58 }
 0x23f   : > { %v1304_v5 = vadd.f32 1.0, %v1847_v4  ;;  %1862 = vpow2.f32 %v1582_v0 }
 0x240   : > { %1864 = vrcp.f32 %v1306_v2  ;;  %v1595_v2 = vmul.f32 -1.442695, %v2212_v12 }
 0x241   : > { %1866 = vrcp.f32 %v1304_v5 }
 0x242   : > { %1868 = vpow2.f32 %v1587_v30 }
 0x243   : > { %1870 = vpow2.f32 %v1585_v8  ;;  %v1594_v8 = vmul.f32 -1.442695, %v2210_v3 }
 0x244   : > { %v1849_v6 = vpop.eup %1848 }
 0x246   : > { %v1851_v7 = vpop.eup %1850 }
 0x247   : > { %v1853_v21 = vpop.eup %1852 }
 0x248   : > { %v1855_v34 = vpop.eup %1854  ;;  %v1309_v11 = vadd.f32 1.0, %v1853_v21 }
 0x249   : > { %v1857_v13 = vpop.eup %1856  ;;  %v1307_v46 = vadd.f32 1.0, %v1855_v34 }
 0x24a   : > { %v1859_v25 = vpop.eup %1858  ;;  %1872 = vrcp.f32 %v1309_v11 }
 0x28a   : > { %v1717_v50 = vpop.f32.mrf.mxu0 }
 0x28b   : > { %v1393_v22 = vmul.f32 %v1825_v40, %v1717_v50  ;;  %v1588_v40 = vmul.f32 -1.442695, %v2198_v31  ;;  %v1861_v50 = vpop.eup %1860 }
 0x28c   : > { %v1072_v27 = vpop.f32.mrf.mxu0  ;;  %v1863_v26 = vpop.eup %1862 }
 0x28d   : > { %1425 = vst [vmem:[%s2237_s30 + $0x10] sm:$0xff] %v1393_v22  ;;  %v1391_v28 = vmul.f32 %v1829_v20, %v1072_v27  ;;  %v1586_v20 = vmul.f32 -1.442695, %v2194_v19  ;;  %v1310_v22 = vadd.f32 1.0, %v1859_v25  ;;  %1874 = vpow2.f32 %v1588_v40  ;;  %v1865_v27 = vpop.eup %1864 }
 0x28e   : > { %v1718_v33 = vpop.f32.mrf.mxu0  ;;  %1876 = vrcp.f32 %v1307_v46  ;;  %v1308_v54 = vadd.f32 1.0, %v1863_v26  ;;  %v891_v26 = vpop.f32.mrf.mxu1 }
 0x28f   : > { %1423 = vst [vmem:[%s2237_s30] sm:$0xff] %v1391_v28  ;;  %v1394_v36 = vmul.f32 %v1833_v29, %v1718_v33  ;;  %1878 = vpow2.f32 %v1586_v20  ;;  %v1867_v29 = vpop.eup %1866 }
 0x290   : > { %v1075_v42 = vpop.f32.mrf.mxu0  ;;  %1880 = vrcp.f32 %v1310_v22  ;;  %v1597_v22 = vmul.f32 -1.442695, %v2216_v24 }
 0x291   : > { %1426 = vst [vmem:[%s2237_s30 + $0x18] sm:$0xff] %v1394_v36  ;;  %v1392_v44 = vmul.f32 %v1835_v38, %v1075_v42  ;;  %1882 = vrcp.f32 %v1308_v54  ;;  %v1869_v36 = vpop.eup %1868  ;;  %v1589_v38 = vmul.f32 -1.442695, %v2200_v37 }
 0x292   : > { %v1871_v42 = vpop.eup %1870  ;;  %1884 = vpow2.f32 %v1591_v35 }
 0x293   : > { %1424 = vst [vmem:[%s2237_s30 + $0x8] sm:$0xff] %v1392_v44  ;;  %v1313_v44 = vadd.f32 1.0, %v1869_v36  ;;  %v1873_v45 = vpop.eup %1872  ;;  %v1311_v49 = vadd.f32 1.0, %v1871_v42  ;;  %1886 = vpow2.f32 %v1589_v38 }
 0x295   : > { %1888 = vrcp.f32 %v1313_v44 }
 0x296   : > { %1890 = vpow2.f32 %v1592_v47 }
 0x297   : > { %1892 = vrcp.f32 %v1311_v49 }
 0x298   : > { %1894 = vpow2.f32 %v1590_v55 }
 0x29a   : > { %v1721_v60 = vpop.f32.mrf.mxu0  ;;  %v1875_v48 = vpop.eup %1874 }
 0x29b   : > { %v1397_v1 = vmul.f32 %v1841_v53, %v1721_v60  ;;  %v1877_v53 = vpop.eup %1876  ;;  %v1314_v58 = vadd.f32 1.0, %v1875_v48 }
 0x29c   : > { %v1088_v59 = vpop.f32.mrf.mxu0  ;;  %v1879_v51 = vpop.eup %1878 }
 0x29d   : > { %1429 = vst [vmem:[%s2237_s30 + $0x30] sm:$0xff] %v1397_v1  ;;  %v1395_v14 = vmul.f32 %v1845_v61, %v1088_v59  ;;  %v1881_v61 = vpop.eup %1880  ;;  %v1312_v0 = vadd.f32 1.0, %v1879_v51  ;;  %1896 = vrcp.f32 %v1314_v58 }
 0x29e   : > { %v1722_v10 = vpop.f32.mrf.mxu0  ;;  %v1883_v4 = vpop.eup %1882 }
 0x29f   : > { %1427 = vst [vmem:[%s2237_s30 + $0x20] sm:$0xff] %v1395_v14  ;;  %v1398_v16 = vmul.f32 %v1849_v6, %v1722_v10  ;;  %1898 = vrcp.f32 %v1312_v0  ;;  %v1885_v14 = vpop.eup %1884  ;;  %v1593_v6 = vmul.f32 -1.442695, %v2208_v62 }
 0x2a0   : > { %v1091_v9 = vpop.f32.mrf.mxu0  ;;  %v1887_v10 = vpop.eup %1886  ;;  %v1317_v5 = vadd.f32 1.0, %v1885_v14  ;;  %1900 = vpow2.f32 %v1595_v2 }
 0x2a1   : > { %1430 = vst [vmem:[%s2237_s30 + $0x38] sm:$0xff] %v1398_v16  ;;  %v1396_v63 = vmul.f32 %v1851_v7, %v1091_v9  ;;  %v1596_v7 = vmul.f32 -1.442695, %v2214_v17  ;;  %1902 = vpow2.f32 %v1593_v6 }
 0x2a2   : > { %v1889_v16 = vpop.eup %1888  ;;  %1904 = vrcp.f32 %v1317_v5 }
 0x2a3   : > { %1428 = vst [vmem:[%s2237_s30 + $0x28] sm:$0xff] %v1396_v63  ;;  %v1891_v9 = vpop.eup %1890  ;;  %v1315_v63 = vadd.f32 1.0, %v1887_v10  ;;  %1906 = vpow2.f32 %v1596_v7 }
 0x2a4   : > { %v1893_v21 = vpop.eup %1892  ;;  %v1318_v11 = vadd.f32 1.0, %v1891_v9 }
 0x2a5   : > { %v1895_v12 = vpop.eup %1894  ;;  %1908 = vrcp.f32 %v1315_v63 }
 0x2a6   : > { %v1316_v25 = vadd.f32 1.0, %v1895_v12  ;;  %1910 = vpow2.f32 %v1594_v8 }
 0x2a7   : > { %1912 = vrcp.f32 %v1318_v11 }
 0x2a8   : > { %1914 = vrcp.f32 %v1316_v25 }
 0x2aa   : > { %v1725_v18 = vpop.f32.mrf.mxu0  ;;  %v1897_v40 = vpop.eup %1896 }
 0x2ab   : > { %v1401_v39 = vmul.f32 %v1857_v13, %v1725_v18 }
 0x2ac   : > { %v1104_v15 = vpop.f32.mrf.mxu0  ;;  %v1899_v18 = vpop.eup %1898 }
 0x2ad   : > { %1433 = vst [vmem:[%s2237_s30 + $0x50] sm:$0xff] %v1401_v39  ;;  %v1399_v23 = vmul.f32 %v1861_v50, %v1104_v15  ;;  %v1901_v20 = vpop.eup %1900  ;;  %v1599_v39 = vmul.f32 -1.442695, %v2220_v41 }
 0x2ae   : > { %v1726_v31 = vpop.f32.mrf.mxu0  ;;  %v1903_v15 = vpop.eup %1902 }
 0x2af   : > { %1431 = vst [vmem:[%s2237_s30 + $0x40] sm:$0xff] %v1399_v23  ;;  %v1402_v28 = vmul.f32 %v1865_v27, %v1726_v31  ;;  %v1321_v23 = vadd.f32 1.0, %v1901_v20  ;;  %v1905_v27 = vpop.eup %1904  ;;  %1916 = vpow2.f32 %v1599_v39  ;;  %v1600_v31 = vmul.f32 -1.442695, %v891_v26 }
 0x2b0   : > { %v1107_v33 = vpop.f32.mrf.mxu0  ;;  %v1907_v54 = vpop.eup %1906  ;;  %1918 = vpow2.f32 %v1597_v22 }
 0x2b1   : > { %1434 = vst [vmem:[%s2237_s30 + $0x58] sm:$0xff] %v1402_v28  ;;  %v1400_v19 = vmul.f32 %v1867_v29, %v1107_v33  ;;  %v1319_v28 = vadd.f32 1.0, %v1903_v15  ;;  %1920 = vrcp.f32 %v1321_v23  ;;  %v1322_v38 = vadd.f32 1.0, %v1907_v54 }
 0x2b2   : > { %v1909_v33 = vpop.eup %1908  ;;  %1922 = vpow2.f32 %v1600_v31 }
 0x2b3   : > { %1432 = vst [vmem:[%s2237_s30 + $0x48] sm:$0xff] %v1400_v19  ;;  %v1598_v19 = vmul.f32 -1.442695, %v2218_v32  ;;  %v1911_v36 = vpop.eup %1910  ;;  %1924 = vrcp.f32 %v1319_v28 }
 0x2b4   : > { %v1913_v42 = vpop.eup %1912 }
 0x2b5   : > { %1926 = vpow2.f32 %v1598_v19  ;;  %v1915_v48 = vpop.eup %1914 }
 0x2b6   : > { %1928 = vrcp.f32 %v1322_v38 }
 0x2ba   : > { %v1729_v52 = vpop.f32.mrf.mxu0 }
 0x2bb   : > { %v1405_v57 = vmul.f32 %v1873_v45, %v1729_v52  ;;  %v1320_v45 = vadd.f32 1.0, %v1911_v36 }
 0x2bc   : > { %v1120_v37 = vpop.f32.mrf.mxu0  ;;  %v1917_v52 = vpop.eup %1916 }
 0x2bd   : > { %1437 = vst [vmem:[%s2237_s30 + $0x70] sm:$0xff] %v1405_v57  ;;  %v1403_v60 = vmul.f32 %v1877_v53, %v1120_v37  ;;  %1930 = vrcp.f32 %v1320_v45  ;;  %v1919_v53 = vpop.eup %1918  ;;  %v1325_v57 = vadd.f32 1.0, %v1917_v52 }
 0x2be   : > { %v1730_v56 = vpop.f32.mrf.mxu0  ;;  %v1921_v55 = vpop.eup %1920 }
 0x2bf   : > { %1435 = vst [vmem:[%s2237_s30 + $0x60] sm:$0xff] %v1403_v60  ;;  %v1406_v1 = vmul.f32 %v1881_v61, %v1730_v56  ;;  %v1923_v51 = vpop.eup %1922  ;;  %v1323_v60 = vadd.f32 1.0, %v1919_v53  ;;  %1932 = vrcp.f32 %v1325_v57 }
 0x2c0   : > { %v1123_v59 = vpop.f32.mrf.mxu0  ;;  %v1925_v58 = vpop.eup %1924 }
 0x2c1   : > { %1438 = vst [vmem:[%s2237_s30 + $0x78] sm:$0xff] %v1406_v1  ;;  %v1404_v43 = vmul.f32 %v1883_v4, %v1123_v59  ;;  %v1326_v1 = vadd.f32 1.0, %v1923_v51  ;;  %1934 = vrcp.f32 %v1323_v60 }
 0x2c2   : > { %v1927_v56 = vpop.eup %1926 }
 0x2c3   : > { %1436 = vst [vmem:[%s2237_s30 + $0x68] sm:$0xff] %v1404_v43  ;;  %v1929_v59 = vpop.eup %1928  ;;  %v1324_v2 = vadd.f32 1.0, %v1927_v56  ;;  %1936 = vrcp.f32 %v1326_v1 }
 0x2c5   : > { %1938 = vrcp.f32 %v1324_v2 }
 0x2ca   : > { %v1733_v30 = vpop.f32.mrf.mxu0  ;;  %v1931_v6 = vpop.eup %1930 }
 0x2cb   : > { %v1409_v34 = vmul.f32 %v1889_v16, %v1733_v30 }
 0x2cc   : > { %v1136_v62 = vpop.f32.mrf.mxu0  ;;  %v1933_v16 = vpop.eup %1932 }
 0x2cd   : > { %1441 = vst [vmem:[%s2237_s30 + $0x90] sm:$0xff] %v1409_v34  ;;  %v1407_v13 = vmul.f32 %v1893_v21, %v1136_v62 }
 0x2ce   : > { %v1734_v17 = vpop.f32.mrf.mxu0  ;;  %v1935_v63 = vpop.eup %1934 }
 0x2cf   : > { %1439 = vst [vmem:[%s2237_s30 + $0x80] sm:$0xff] %v1407_v13  ;;  %v1410_v46 = vmul.f32 %v1897_v40, %v1734_v17 }
 0x2d0   : > { %v1139_v50 = vpop.f32.mrf.mxu0  ;;  %v1937_v8 = vpop.eup %1936 }
 0x2d1   : > { %1442 = vst [vmem:[%s2237_s30 + $0x98] sm:$0xff] %v1410_v46  ;;  %v1408_v3 = vmul.f32 %v1899_v18, %v1139_v50 }
 0x2d2   : > { %v1939_v62 = vpop.eup %1938 }
 0x2d3   : > { %1440 = vst [vmem:[%s2237_s30 + $0x88] sm:$0xff] %v1408_v3 }
 0x2da   : > { %v1737_v29 = vpop.f32.mrf.mxu0 }
 0x2db   : > { %v1413_v35 = vmul.f32 %v1905_v27, %v1737_v29 }
 0x2dc   : > { %v1152_v41 = vpop.f32.mrf.mxu0 }
 0x2dd   : > { %1445 = vst [vmem:[%s2237_s30 + $0xb0] sm:$0xff] %v1413_v35  ;;  %v1411_v24 = vmul.f32 %v1909_v33, %v1152_v41 }
 0x2de   : > { %v1738_v44 = vpop.f32.mrf.mxu0 }
 0x2df   : > { %1443 = vst [vmem:[%s2237_s30 + $0xa0] sm:$0xff] %v1411_v24  ;;  %v1414_v47 = vmul.f32 %v1913_v42, %v1738_v44 }
 0x2e0   : > { %v1155_v49 = vpop.f32.mrf.mxu0 }
 0x2e1   : > { %1446 = vst [vmem:[%s2237_s30 + $0xb8] sm:$0xff] %v1414_v47  ;;  %v1412_v32 = vmul.f32 %v1915_v48, %v1155_v49 }
 0x2e3   : > { %1444 = vst [vmem:[%s2237_s30 + $0xa8] sm:$0xff] %v1412_v32 }
 0x2ea   : > { %v1741_v37 = vpop.f32.mrf.mxu0 }
 0x2eb   : > { %v1417_v61 = vmul.f32 %v1921_v55, %v1741_v37 }
 0x2ec   : > { %v1168_v0 = vpop.f32.mrf.mxu0 }
 0x2ed   : > { %1449 = vst [vmem:[%s2237_s30 + $0xd0] sm:$0xff] %v1417_v61  ;;  %v1415_v4 = vmul.f32 %v1925_v58, %v1168_v0 }
 0x2ee   : > { %v1742_v43 = vpop.f32.mrf.mxu0 }
 0x2ef   : > { %1447 = vst [vmem:[%s2237_s30 + $0xc0] sm:$0xff] %v1415_v4  ;;  %v1418_v14 = vmul.f32 %v1929_v59, %v1742_v43 }
 0x2f0   : > { %v1171_v10 = vpop.f32.mrf.mxu0 }
 0x2f1   : > { %1450 = vst [vmem:[%s2237_s30 + $0xd8] sm:$0xff] %v1418_v14  ;;  %v1416_v5 = vmul.f32 %v1931_v6, %v1171_v10 }
 0x2f3   : > { %1448 = vst [vmem:[%s2237_s30 + $0xc8] sm:$0xff] %v1416_v5 }
 0x2fa   : > { %v1745_v7 = vpop.f32.mrf.mxu0 }
 0x2fb   : > { %v1421_v9 = vmul.f32 %v1933_v16, %v1745_v7 }
 0x2fc   : > { %v1184_v30 = vpop.f32.mrf.mxu0 }
 0x2fd   : > { %1453 = vst [vmem:[%s2237_s30 + $0xf0] sm:$0xff] %v1421_v9  ;;  %v1419_v21 = vmul.f32 %v1935_v63, %v1184_v30 }
 0x2fe   : > { %v1746_v34 = vpop.f32.mrf.mxu0 }
 0x2ff   : > { %1451 = vst [vmem:[%s2237_s30 + $0xe0] sm:$0xff] %v1419_v21  ;;  %v1422_v12 = vmul.f32 %v1937_v8, %v1746_v34 }
 0x300   : > { %v1187_v11 = vpop.f32.mrf.mxu0 }
 0x301   : > { %1454 = vst [vmem:[%s2237_s30 + $0xf8] sm:$0xff] %v1422_v12  ;;  %v1420_v13 = vmul.f32 %v1939_v62, %v1187_v11 }
 0x303   : > { %1452 = vst [vmem:[%s2237_s30 + $0xe8] sm:$0xff] %v1420_v13 }
 0x304 PF: > { %s15_s18 = sadd.s32 1, %s1946_s18  }
 0x305   : > { %p12_p4 = scmp.ge.s32.totalorder %s15_s18, 4  }
 0x307   :  { %14 = sbr.rel (!%p12_p4) target bundleno = 1 (0x1), region = 70 }

</bundles_post_ra>
